<compile_context>
chip_gen: v5e
topology: v5e:2x2
jax: 0.10.0
libtpu: 0.0.40
codegen_flags: <defaults>
</compile_context>

<pallas_src>
import jax
import jax.numpy as jnp
from jax.experimental import pallas as pl
from jax.experimental.pallas import tpu as pltpu


def _hbm_copy_kernel(x_hbm, o_hbm, sem):
    # Single HBM -> HBM DMA of the whole array; no VMEM round trip.
    cp = pltpu.make_async_copy(x_hbm, o_hbm, sem)
    cp.start()
    cp.wait()


def _pallas_fresh_copy(x3: jax.Array) -> jax.Array:
    """Fresh (non-aliased) copy of a 3-D array via one streaming HBM DMA."""
    nbytes = x3.size * jnp.dtype(x3.dtype).itemsize
    return pl.pallas_call(
        _hbm_copy_kernel,
        out_shape=jax.ShapeDtypeStruct(x3.shape, x3.dtype),
        in_specs=[pl.BlockSpec(memory_space=pl.ANY)],
        out_specs=pl.BlockSpec(memory_space=pl.ANY),
        scratch_shapes=[pltpu.SemaphoreType.DMA(())],
        cost_estimate=pl.CostEstimate(
            flops=0, transcendentals=0, bytes_accessed=2 * nbytes
        ),
    )(x3)


def identity_encoder(x: jax.Array, *, copy: bool = False) -> jax.Array:
    """JAX/Pallas equivalent of IdentityEncoder.forward.

    Ensures the output is rank-3 (B, T, dim).  By default this is a pure
    metadata operation (no data movement).  Pass copy=True to force a fresh,
    non-aliased output buffer produced by a single HBM->HBM DMA kernel.
    """
    if x.ndim == 1:
        x3 = x[None, None, :]          # (dim,)   -> (1, 1, dim)
    elif x.ndim == 2:
        x3 = x[None, :, :]             # (B, dim) -> (1, B, dim)
    elif x.ndim == 3:
        x3 = x
    else:
        raise ValueError(
            "Input must have shape (dim_size), (B, dim_size), or (B, T, dim_size)"
        )

    if not copy or x3.size == 0:
        # Identity: rank promotion only, zero bytes moved.
        return x3

    return _pallas_fresh_copy(x3)


if __name__ == "__main__":
    key = jax.random.PRNGKey(0)
    k1, k2, k3, k4 = jax.random.split(key, 4)

    # Small shapes consistent with the module's contract.
    x3 = jax.random.normal(k1, (2, 8, 32), dtype=jnp.float32)    # (B, T, dim)
    x2 = jax.random.normal(k2, (4, 32), dtype=jnp.float32)       # (B, dim)
    x1 = jax.random.normal(k3, (32,), dtype=jnp.float32)         # (dim,)

    # Default path: metadata-only rank promotion (no data movement).
    y3 = jax.block_until_ready(identity_encoder(x3))
    y2 = jax.block_until_ready(identity_encoder(x2))
    y1 = jax.block_until_ready(identity_encoder(x1))

    assert y3.shape == (2, 8, 32) and bool(jnp.array_equal(y3, x3))
    assert y2.shape == (1, 4, 32) and bool(jnp.array_equal(y2[0], x2))
    assert y1.shape == (1, 1, 32) and bool(jnp.array_equal(y1[0, 0], x1))

    # Kernel path: fresh-buffer copy through a single HBM->HBM DMA.
    yk3 = jax.block_until_ready(identity_encoder(x3, copy=True))
    assert yk3.shape == (2, 8, 32) and bool(jnp.array_equal(yk3, x3))

    yk2 = jax.block_until_ready(identity_encoder(x2, copy=True))
    assert yk2.shape == (1, 4, 32) and bool(jnp.array_equal(yk2[0], x2))

    # Awkward (non-128-aligned) shape: DMA path has no lane-alignment constraint.
    xo = jax.random.normal(k4, (3, 5, 7), dtype=jnp.float32)
    yo = jax.block_until_ready(identity_encoder(xo, copy=True))
    assert yo.shape == (3, 5, 7) and bool(jnp.array_equal(yo, xo))

    print("KERNEL_OK")
</pallas_src>

<mosaic_0001>
module attributes {stable_mosaic.version = 11 : i64} {
  func.func @_hbm_copy_kernel(%arg0: memref<2x8x32xf32, #tpu.memory_space<any>>, %arg1: memref<2x8x32xf32, #tpu.memory_space<any>>, %arg2: memref<!tpu.dma_semaphore, #tpu.memory_space<semaphore_mem>>) attributes {dimension_semantics = [], scalar_prefetch = 0 : i64, scratch_operands = 1 : i64, tpu.core_type = #tpu.core_type<tc>} {
    tpu.enqueue_dma source(%arg0 : memref<2x8x32xf32, #tpu.memory_space<any>>) target(%arg1 : memref<2x8x32xf32, #tpu.memory_space<any>>) target_semaphore(%arg2 : memref<!tpu.dma_semaphore, #tpu.memory_space<semaphore_mem>>)
    tpu.wait_dma2 semaphore(%arg2 : memref<!tpu.dma_semaphore, #tpu.memory_space<semaphore_mem>>) src(%arg0 : memref<2x8x32xf32, #tpu.memory_space<any>>) dst(%arg1 : memref<2x8x32xf32, #tpu.memory_space<any>>)
    return
  }
}

</mosaic_0001>

<bundles_post_ra>
// kernel: tpu_custom_call.1
= control target key start
LH: loop header
LB: loop body
LE: loop exit
PB: predicated region body
PF: predicated region fallthrough
CT: control target
= control target key end

     0   :  { %s33_s12 = smov [#allocation2]   ;;  %s34_s13 = smov [#allocation3]   ;;  %s52_s0 = inlined_call_operand.hbm [shape: f32[2,8,32], index: 0, kind: input, shape index: {}]   ;;  %s53_s1 = inlined_call_operand.hbm [shape: f32[2,8,32], index: 1, kind: output, shape index: {}]  }
   0x1   :  { %s10_s8 = sshll.u32 %s52_s0, 4  ;;  %s12_s11 = sshll.u32 %s53_s1, 4  ;;  %s11_s8 = int_to_ptr.hbm [resolvable:$true] %s10_s8  ;;  %s13_s11 = int_to_ptr.hbm [resolvable:$true] %s12_s11 }
   0x2   :  { %s35_s14 = smov 0  }
   0x3   :  { %16 = dma.general %s11_s8, 256, %s13_s11, %s33_s12, %s34_s13, [#allocation4], %s35_s14, 0  }
   0x4   :  { %31 = dma.done.wait [#allocation2], 256 }
   0x5   :  { %32 = vsyncadd [#allocation2], 4294967040 }
   0x6   :  { %21 = vsyncmov [#allocation2] }
   0x9   :  { %s22_s15 = vpop.sfrf %21 }
   0xa   :  { %p27_p0 = scmp.ne.s32.totalorder %s22_s15, 0 }
   0xc   :  { %26 = shalt.err (%p27_p0)  }

</bundles_post_ra>
